<compile_context>
chip_gen: v6e
topology: v6e:2x2x1
jax: 0.10.0
libtpu: 0.0.40
codegen_flags: <defaults>
</compile_context>

<pallas_src>
import functools

import jax
import jax.numpy as jnp
from jax.experimental import pallas as pl
from jax.experimental.pallas import tpu as pltpu


def _round_up(x, m):
    return ((x + m - 1) // m) * m


# --- single-buffering for resident (constant-index) blocks --------------------
try:
    _BUFFERED_ONE = pl.Buffered(1)
except Exception:  # older jax without pipeline_mode support
    _BUFFERED_ONE = None


def _resident_spec(shape):
    """Full-extent block, constant index_map: fetched once, kept in VMEM."""
    if _BUFFERED_ONE is not None:
        try:
            return pl.BlockSpec(shape, lambda i: (0, 0), pipeline_mode=_BUFFERED_ONE)
        except TypeError:
            pass
    return pl.BlockSpec(shape, lambda i: (0, 0))


def _fused_mlp_kernel(*refs, num_layers, acts):
    """One (tile_m, K_in) row-tile through `num_layers` fused Linear+act layers.

    refs = (x_ref, w0_ref, b0_ref, ..., w{n-1}_ref, b{n-1}_ref, o_ref).
    MXU operands are bf16; accumulation, bias add and activations are f32;
    intermediate activations never leave vregs/VMEM.
    """
    x_ref = refs[0]
    o_ref = refs[-1]
    wb = refs[1:-1]

    h = x_ref[...].astype(jnp.bfloat16)  # in-kernel cast: VPU work hidden under MXU
    for li in range(num_layers):
        w_ref = wb[2 * li]
        b_ref = wb[2 * li + 1]
        acc = jnp.dot(h, w_ref[...], preferred_element_type=jnp.float32)
        acc = acc + b_ref[...]                      # (1, pn) f32 broadcast
        act = acts[li]
        if act == "leaky_relu":
            acc = jnp.maximum(acc, 0.2 * acc)       # 2 elementwise passes, not 3
        elif act == "relu":
            acc = jnp.maximum(acc, 0.0)
        # act == "none": identity
        if li < num_layers - 1:
            h = acc.astype(jnp.bfloat16)            # next layer's MXU operand
        else:
            o_ref[...] = acc.astype(o_ref.dtype)


def _vmem_budget():
    cap = 64 << 20  # conservative default (v7x per-TC VMEM)
    try:
        info = pltpu.get_tpu_info()
        cap = int(getattr(info, "vmem_capacity_bytes", cap))
    except Exception:
        pass
    # ~102 MiB on 128-MiB v5e/v6e, ~51 MiB on 64-MiB v7x
    return int(cap * 0.8)


def _split_layer_groups(prepared, limit_bytes):
    """Greedily group consecutive layers so resident weights fit `limit_bytes`."""
    groups, cur, cur_b = [], [], 0
    for (w, b) in prepared:
        lb = int(w.size) * w.dtype.itemsize + int(b.size) * b.dtype.itemsize
        if cur and cur_b + lb > limit_bytes:
            groups.append(cur)
            cur, cur_b = [], 0
        cur.append((w, b))
        cur_b += lb
    groups.append(cur)
    # TODO(synk): a single layer whose padded weights alone exceed the VMEM
    # budget would additionally need an N/K-tiled matmul fallback.
    return groups


def _run_group(xg, group, acts_g, tile_m_req, budget, out_dtype_g):
    """One pallas_call: a group of consecutive layers with weights resident in VMEM."""
    M, K_in = xg.shape
    pns = [w.shape[1] for (w, _) in group]
    pn_out = pns[-1]
    x_bytes = jnp.dtype(xg.dtype).itemsize
    o_bytes = jnp.dtype(out_dtype_g).itemsize
    resident = sum(int(w.size) * w.dtype.itemsize + int(b.size) * b.dtype.itemsize
                   for (w, b) in group)

    # --- batch tile: generation-aware, and >=2 grid steps when possible -------
    m8 = _round_up(M, 8)
    tile_m = tile_m_req if tile_m_req is not None else (2048 if budget >= (90 << 20) else 512)
    tile_m = max(8, _round_up(min(tile_m, m8), 8))
    if m8 > 8 and m8 <= tile_m:
        # Whole batch would be one step: split in two so v7x's 2nd TC has work.
        tile_m = _round_up((M + 1) // 2, 8)

    def _footprint(t):
        stream = 2 * t * (K_in * x_bytes + pn_out * o_bytes)   # dbl-buffered x/out tiles
        scratch = t * max(pns) * 6                             # live h (bf16) + acc (f32)
        return resident + stream + scratch + (2 << 20)         # Mosaic headroom

    while tile_m > 8 and _footprint(tile_m) > budget:
        tile_m = max(8, _round_up(tile_m // 2, 8))
    grid_m = pl.cdiv(M, tile_m)

    # --- specs -----------------------------------------------------------------
    flat_inputs = [xg]
    in_specs = [pl.BlockSpec((tile_m, K_in), lambda i: (i, 0))]
    for (w, b) in group:
        flat_inputs.extend([w, b])
        in_specs.append(_resident_spec(w.shape))
        in_specs.append(_resident_spec(b.shape))
    out_specs = pl.BlockSpec((tile_m, pn_out), lambda i: (i, 0))
    out_shape = jax.ShapeDtypeStruct((M, pn_out), out_dtype_g)

    flops = 2 * M * sum(int(w.shape[0]) * int(w.shape[1]) for (w, _) in group)
    cost = pl.CostEstimate(
        flops=int(flops),
        transcendentals=0,
        bytes_accessed=int(M * K_in * x_bytes + M * pn_out * o_bytes + resident),
    )

    kernel = functools.partial(_fused_mlp_kernel, num_layers=len(group),
                               acts=tuple(acts_g))
    return pl.pallas_call(
        kernel,
        out_shape=out_shape,
        grid=(grid_m,),
        in_specs=in_specs,
        out_specs=out_specs,
        compiler_params=pltpu.CompilerParams(
            dimension_semantics=("parallel",),
            vmem_limit_bytes=int(budget),
        ),
        cost_estimate=cost,
    )(*flat_inputs)


def prepare_params(params):
    """Pad + cast every (W, b) ONCE (hoisted out of the forward pass).

    Layer 0 keeps its real contracting dim (x is passed unpadded, full-dim
    block); all output dims (and subsequent contracting dims) are padded to a
    multiple of 128 for lane-dense MXU operands and stores.
    Returns (prepared_params, out_dim).
    """
    prepared = []
    for li, (w, b) in enumerate(params):
        din, dout = w.shape
        pk = din if li == 0 else _round_up(din, 128)
        pn = _round_up(dout, 128)
        w_p = jnp.pad(w.astype(jnp.bfloat16), ((0, pk - din), (0, pn - dout)))
        b_p = jnp.pad(b.astype(jnp.float32), (0, pn - dout)).reshape(1, pn)
        prepared.append((w_p, b_p))
    return prepared, int(params[-1][0].shape[1])


@functools.partial(
    jax.jit,
    static_argnames=("out_dim", "relu", "tile_m", "out_dtype", "max_group_bytes"))
def delta_mlp_forward(x, prepared, *, out_dim, relu=True, tile_m=None,
                      out_dtype=jnp.float32, max_group_bytes=None):
    """Forward pass of Delta_MLP. `prepared` comes from prepare_params().

    x: (..., inp_dim) float32. Returns (..., out_dim) in `out_dtype`.
    Note: for out_dim << 128 the padded 128-lane store writes extra bytes;
    pass out_dtype=jnp.bfloat16 to halve the output HBM stream (accumulation
    stays f32 either way).
    """
    lead = x.shape[:-1]
    h = x.reshape(-1, x.shape[-1])

    n = len(prepared)
    acts = ["leaky_relu"] * (n - 1) + ["relu" if relu else "none"]

    budget = _vmem_budget()
    limit = max_group_bytes if max_group_bytes is not None else int(budget * 0.55)
    groups = _split_layer_groups(prepared, limit)

    li = 0
    for gi, group in enumerate(groups):
        acts_g = acts[li:li + len(group)]
        li += len(group)
        is_last = gi == len(groups) - 1
        dt = out_dtype if is_last else jnp.bfloat16  # bf16 inter-group activations
        h = _run_group(h, group, acts_g, tile_m, budget, dt)

    return h[:, :out_dim].reshape(*lead, out_dim)


def init_delta_mlp_params(key, inp_dim, out_dim, num_layers, layers, bias=True):
    """Deterministic parameter init mirroring Delta_MLP.__init__ + weights_init."""
    params = []
    incoming = inp_dim
    layers_ = list(layers)
    dims = []
    for _ in range(num_layers - 1):
        outgoing = layers_.pop(0) if layers_ else incoming
        dims.append((incoming, outgoing))
        incoming = outgoing
    dims.append((incoming, out_dim))

    for (din, dout) in dims:
        key, wk = jax.random.split(key)
        # PyTorch nn.Linear weight is (dout, din); weights_init: N(0, 0.02), bias 0.
        w_pt = 0.02 * jax.random.normal(wk, (dout, din), dtype=jnp.float32)
        b = jnp.zeros((dout,), dtype=jnp.float32)  # bias=False is still a zero add
        params.append((w_pt.T, b))                 # store as (din, dout) for x @ W
    return params


def _reference_forward(x, params, relu=True):
    """Pure-JAX reference with the same bf16-operand / f32-accumulate policy."""
    n = len(params)
    h = x
    for i, (w, b) in enumerate(params):
        acc = jnp.dot(
            h.astype(jnp.bfloat16),
            w.astype(jnp.bfloat16),
            preferred_element_type=jnp.float32,
        ) + b
        if i < n - 1:
            acc = jnp.where(acc >= 0.0, acc, 0.2 * acc)
        elif relu:
            acc = jnp.maximum(acc, 0.0)
        h = acc
    return h


if __name__ == "__main__":
    # Small config: Delta_MLP(inp_dim=32, out_dim=16, num_layers=3,
    #                         relu=True, bias=True, layers=[64, 128])
    inp_dim, out_dim = 32, 16
    num_layers = 3
    layers = [64, 128]
    batch = 64

    key = jax.random.PRNGKey(0)
    key, xk = jax.random.split(key)
    x = jax.random.normal(xk, (batch, inp_dim), dtype=jnp.float32)

    params = init_delta_mlp_params(key, inp_dim, out_dim, num_layers, layers)
    prepared, odim = prepare_params(params)
    ref = _reference_forward(x, params, relu=True)

    # 1) Fully fused path: explicit tile_m=32 -> 2-step parallel batch grid.
    out = delta_mlp_forward(x, prepared, out_dim=odim, relu=True, tile_m=32)
    out = jax.block_until_ready(out)
    assert out.shape == (batch, out_dim), out.shape
    assert jnp.allclose(out, ref, atol=1e-3, rtol=1e-2), "mismatch vs JAX reference"

    # 2) VMEM-fallback path (forces 2 layer groups) + bf16 output stream.
    out2 = delta_mlp_forward(x, prepared, out_dim=odim, relu=True,
                             out_dtype=jnp.bfloat16, max_group_bytes=48 * 1024)
    out2 = jax.block_until_ready(out2)
    assert out2.shape == (batch, out_dim), out2.shape
    assert jnp.allclose(out2.astype(jnp.float32), ref, atol=1e-3, rtol=1e-2), \
        "mismatch vs JAX reference (grouped / bf16 path)"

    print("KERNEL_OK")
</pallas_src>

<mosaic_0001>
module attributes {stable_mosaic.version = 11 : i64} {
  func.func @_fused_mlp_kernel(%arg0: i32, %arg1: memref<32x32xf32, #tpu.memory_space<vmem>>, %arg2: memref<32x128xbf16, #tpu.memory_space<vmem>>, %arg3: memref<1x128xf32, #tpu.memory_space<vmem>>, %arg4: memref<128x128xbf16, #tpu.memory_space<vmem>>, %arg5: memref<1x128xf32, #tpu.memory_space<vmem>>, %arg6: memref<128x128xbf16, #tpu.memory_space<vmem>>, %arg7: memref<1x128xf32, #tpu.memory_space<vmem>>, %arg8: memref<32x128xf32, #tpu.memory_space<vmem>>) attributes {dimension_semantics = [#tpu.dimension_semantics<parallel>], iteration_bounds = array<i64: 2>, scalar_prefetch = 0 : i64, scratch_operands = 0 : i64, tpu.core_type = #tpu.core_type<tc>, window_params = [{transform_indices = @transform_0, window_bounds = array<i64: 32, 32>}, {pipeline_mode = #tpu.pipeline_mode<synchronous>, transform_indices = @transform_1, window_bounds = array<i64: 32, 128>}, {pipeline_mode = #tpu.pipeline_mode<synchronous>, transform_indices = @transform_2, window_bounds = array<i64: 1, 128>}, {pipeline_mode = #tpu.pipeline_mode<synchronous>, transform_indices = @transform_3, window_bounds = array<i64: 128, 128>}, {pipeline_mode = #tpu.pipeline_mode<synchronous>, transform_indices = @transform_4, window_bounds = array<i64: 1, 128>}, {pipeline_mode = #tpu.pipeline_mode<synchronous>, transform_indices = @transform_5, window_bounds = array<i64: 128, 128>}, {pipeline_mode = #tpu.pipeline_mode<synchronous>, transform_indices = @transform_6, window_bounds = array<i64: 1, 128>}, {transform_indices = @transform_7, window_bounds = array<i64: 32, 128>}]} {
    %c0 = arith.constant 0 : index
    %c0_0 = arith.constant 0 : index
    %0 = vector.load %arg1[%c0, %c0_0] : memref<32x32xf32, #tpu.memory_space<vmem>>, vector<32x32xf32>
    %1 = arith.truncf %0 : vector<32x32xf32> to vector<32x32xbf16>
    %c0_1 = arith.constant 0 : index
    %c0_2 = arith.constant 0 : index
    %2 = vector.load %arg2[%c0_1, %c0_2] : memref<32x128xbf16, #tpu.memory_space<vmem>>, vector<32x128xbf16>
    %cst = arith.constant dense<0.000000e+00> : vector<32x128xf32>
    %3 = tpu.matmul %1, %2, %cst {dimension_numbers = #tpu.dot_dimension_numbers<[1], [0], [0], [1], [0, 0, 1, 1], [], []>} : vector<32x32xbf16>, vector<32x128xbf16>, vector<32x128xf32> -> vector<32x128xf32>
    %c0_3 = arith.constant 0 : index
    %c0_4 = arith.constant 0 : index
    %4 = vector.load %arg3[%c0_3, %c0_4] : memref<1x128xf32, #tpu.memory_space<vmem>>, vector<1x128xf32>
    %5 = vector.broadcast %4 : vector<1x128xf32> to vector<32x128xf32>
    %6 = arith.addf %3, %5 : vector<32x128xf32>
    %cst_5 = arith.constant 2.000000e-01 : f32
    %7 = vector.broadcast %cst_5 : f32 to vector<32x128xf32>
    %8 = arith.mulf %7, %6 : vector<32x128xf32>
    %9 = arith.maximumf %6, %8 : vector<32x128xf32>
    %10 = arith.truncf %9 : vector<32x128xf32> to vector<32x128xbf16>
    %c0_6 = arith.constant 0 : index
    %c0_7 = arith.constant 0 : index
    %11 = vector.load %arg4[%c0_6, %c0_7] : memref<128x128xbf16, #tpu.memory_space<vmem>>, vector<128x128xbf16>
    %cst_8 = arith.constant dense<0.000000e+00> : vector<32x128xf32>
    %12 = tpu.matmul %10, %11, %cst_8 {dimension_numbers = #tpu.dot_dimension_numbers<[1], [0], [0], [1], [0, 0, 1, 1], [], []>} : vector<32x128xbf16>, vector<128x128xbf16>, vector<32x128xf32> -> vector<32x128xf32>
    %c0_9 = arith.constant 0 : index
    %c0_10 = arith.constant 0 : index
    %13 = vector.load %arg5[%c0_9, %c0_10] : memref<1x128xf32, #tpu.memory_space<vmem>>, vector<1x128xf32>
    %14 = vector.broadcast %13 : vector<1x128xf32> to vector<32x128xf32>
    %15 = arith.addf %12, %14 : vector<32x128xf32>
    %cst_11 = arith.constant 2.000000e-01 : f32
    %16 = vector.broadcast %cst_11 : f32 to vector<32x128xf32>
    %17 = arith.mulf %16, %15 : vector<32x128xf32>
    %18 = arith.maximumf %15, %17 : vector<32x128xf32>
    %19 = arith.truncf %18 : vector<32x128xf32> to vector<32x128xbf16>
    %c0_12 = arith.constant 0 : index
    %c0_13 = arith.constant 0 : index
    %20 = vector.load %arg6[%c0_12, %c0_13] : memref<128x128xbf16, #tpu.memory_space<vmem>>, vector<128x128xbf16>
    %cst_14 = arith.constant dense<0.000000e+00> : vector<32x128xf32>
    %21 = tpu.matmul %19, %20, %cst_14 {dimension_numbers = #tpu.dot_dimension_numbers<[1], [0], [0], [1], [0, 0, 1, 1], [], []>} : vector<32x128xbf16>, vector<128x128xbf16>, vector<32x128xf32> -> vector<32x128xf32>
    %c0_15 = arith.constant 0 : index
    %c0_16 = arith.constant 0 : index
    %22 = vector.load %arg7[%c0_15, %c0_16] : memref<1x128xf32, #tpu.memory_space<vmem>>, vector<1x128xf32>
    %23 = vector.broadcast %22 : vector<1x128xf32> to vector<32x128xf32>
    %24 = arith.addf %21, %23 : vector<32x128xf32>
    %cst_17 = arith.constant 0.000000e+00 : f32
    %25 = vector.broadcast %cst_17 : f32 to vector<32x128xf32>
    %26 = arith.maximumf %24, %25 : vector<32x128xf32>
    %c0_18 = arith.constant 0 : index
    %c0_19 = arith.constant 0 : index
    %27 = vector.load %arg8[%c0_18, %c0_19] : memref<32x128xf32, #tpu.memory_space<vmem>>, vector<32x128xf32>
    tpu.vector_store %arg8[%c0_18, %c0_19], %26 {strides = array<i32>} : memref<32x128xf32, #tpu.memory_space<vmem>>, vector<32x128xf32>,
    return
  }
  func.func @transform_0(%arg0: i32) -> (i32, i32) {
    %c0_i32 = arith.constant 0 : i32
    %c0_i32_0 = arith.constant 0 : i32
    return %arg0, %c0_i32 : i32, i32
  }
  func.func @transform_1(%arg0: i32) -> (i32, i32) {
    %c0_i32 = arith.constant 0 : i32
    %c0_i32_0 = arith.constant 0 : i32
    %c0_i32_1 = arith.constant 0 : i32
    return %c0_i32, %c0_i32_0 : i32, i32
  }
  func.func @transform_2(%arg0: i32) -> (i32, i32) {
    %c0_i32 = arith.constant 0 : i32
    %c0_i32_0 = arith.constant 0 : i32
    %c0_i32_1 = arith.constant 0 : i32
    return %c0_i32, %c0_i32_0 : i32, i32
  }
  func.func @transform_3(%arg0: i32) -> (i32, i32) {
    %c0_i32 = arith.constant 0 : i32
    %c0_i32_0 = arith.constant 0 : i32
    %c0_i32_1 = arith.constant 0 : i32
    return %c0_i32, %c0_i32_0 : i32, i32
  }
  func.func @transform_4(%arg0: i32) -> (i32, i32) {
    %c0_i32 = arith.constant 0 : i32
    %c0_i32_0 = arith.constant 0 : i32
    %c0_i32_1 = arith.constant 0 : i32
    return %c0_i32, %c0_i32_0 : i32, i32
  }
  func.func @transform_5(%arg0: i32) -> (i32, i32) {
    %c0_i32 = arith.constant 0 : i32
    %c0_i32_0 = arith.constant 0 : i32
    %c0_i32_1 = arith.constant 0 : i32
    return %c0_i32, %c0_i32_0 : i32, i32
  }
  func.func @transform_6(%arg0: i32) -> (i32, i32) {
    %c0_i32 = arith.constant 0 : i32
    %c0_i32_0 = arith.constant 0 : i32
    %c0_i32_1 = arith.constant 0 : i32
    return %c0_i32, %c0_i32_0 : i32, i32
  }
  func.func @transform_7(%arg0: i32) -> (i32, i32) {
    %c0_i32 = arith.constant 0 : i32
    %c0_i32_0 = arith.constant 0 : i32
    return %arg0, %c0_i32 : i32, i32
  }
}

</mosaic_0001>

<bundles_post_ra>
// kernel: delta_mlp_forward.1
= control target key start
LH: loop header
LB: loop body
LE: loop exit
PB: predicated region body
PF: predicated region fallthrough
CT: control target
= control target key end

     0   :  { %12 = vsyncpa [#allocation3], 0  ;;  %s947_s24 = smov 0   ;;  %s1031_s0 = inlined_call_operand.vmem [shape: f32[64,32], index: 0, kind: input, shape index: {}]   ;;  %s1032_s1 = inlined_call_operand.vmem [shape: bf16[32,128], index: 1, kind: input, shape index: {}]   ;;  %s1033_s2 = inlined_call_operand.vmem [shape: f32[1,128], index: 2, kind: input, shape index: {}]   ;;  %s1034_s3 = inlined_call_operand.vmem [shape: bf16[128,128], index: 3, kind: input, shape index: {}]   ;;  %s1035_s4 = inlined_call_operand.vmem [shape: f32[1,128], index: 4, kind: input, shape index: {}]   ;;  %s1036_s5 = inlined_call_operand.hbm [shape: bf16[128,128], index: 5, kind: input, shape index: {}]   ;;  %s1037_s6 = inlined_call_operand.vmem [shape: f32[1,128], index: 6, kind: input, shape index: {}]   ;;  %s1038_s7 = inlined_call_operand.vmem [shape: f32[64,128], index: 7, kind: output, shape index: {}]  }
   0x1 LB: > { %s719_s25 = sadd.s32 4294967295, %s902_s24   ;;  %p721_p0 = scmp.ge.s32.totalorder %s902_s24, 1  ;;  %s902_s24 = sphi %s947_s24, %s18_s24  }
   0x2   : > { %p201_p1 = scmp.lt.s32.totalorder %s902_s24, 3  ;;  %s904_s26 = smov [#allocation2]  }
   0x3   : > { %s225_s27 = sshll.u32 %s904_s26, 4  ;;  %p959_p3 = scmp.eq.s32.totalorder %s719_s25, 0  ;;  %s226_s27 = int_to_ptr.vmem [resolvable:$true] %s225_s27 }
   0x4   : > { %p955_p2 = pnand %p721_p0, %p201_p1  ;;  %s877_s30 = scalar_lea.vmem %s226_s27, 1024 }
   0x5   : > { %p878_p7 = scmp.ne.s32.totalorder %s226_s27, %s877_s30  ;;  %p885_p10 = scmp.lt.s32.totalorder %s226_s27, %s226_s27 }
   0x6   : > { %p831_p4 = pneg %p955_p2  ;;  %p886_p11 = scmp.lt.s32.totalorder %s877_s30, %s877_s30 }
   0x8   : > { %p832_p5 = pnand %p959_p3, %p831_p4  ;;  %p887_p12 = por %p886_p11, %p885_p10 }
   0xa   : > { %p868_p6 = pneg %p832_p5 }
   0xc   : > { %p880_p8 = pnand %p878_p7, %p868_p6 }
   0xe   : > { %p881_p9 = pneg %p880_p8 }
  0x10   : > { %p888_p13 = pnand %p887_p12, %p881_p9 }
  0x12   : > { %891 = shalt.err (!%p888_p13)
}
  0x13   : > { %s905_s8 = smov 64   ;;  %s906_s9 = smov 4  }
  0x14   : > { %834 = dma.hbm_to_vmem [thread:$0]  (!%p832_p5), %s1036_s5, 1024, %s226_s27, [#allocation3], %s905_s8, %s905_s8, %s906_s9  }
  0x15   : > { %253 = sbr.rel (%p955_p2) target bundleno = 657 (0x291), region = 48 }
  0x1a   : > { %897 = dma.done.wait (%p959_p3), [#allocation3], 1024  }
  0x1b   : > { %899 = vsyncadd (%p959_p3), [#allocation3], 4294966272  ;;  %s726_s12 = sshll.u32 %s719_s25, 2  ;;  %v848_v0 = vld [vmem:[%s1032_s1 + $0x8] sm:$0xff]   ;;  %v849_v1 = vld [vmem:[%s1032_s1] sm:$0xff]   ;;  %vm327_vm0 = vcmask 261120  }
  0x1c   : > { %p286_p0 = scmp.lt.s32.totalorder %s726_s12, 7  ;;  %779 = vmatprep.subr.bf16.mxu0 %v848_v0  ;;  %v850_v7 = vld [vmem:[%s1034_s3 + $0x38] sm:$0xff]   ;;  %v851_v8 = vld [vmem:[%s1034_s3 + $0x30] sm:$0xff]   ;;  %v852_v10 = vld [vmem:[%s1034_s3 + $0x28] sm:$0xff]  }
  0x1d   : > { %780 = vmatpush3.bf16.msra.mxu0 %v848_v0  ;;  %787 = vmatprep.subr.bf16.mxu1 %v850_v7  ;;  %v853_v11 = vld [vmem:[%s1034_s3 + $0x20] sm:$0xff]   ;;  %v854_v12 = vld [vmem:[%s1034_s3 + $0x18] sm:$0xff]   ;;  %v855_v13 = vld [vmem:[%s1034_s3 + $0x10] sm:$0xff]  }
  0x1e   : > { %s1042_s12 = smov (!%p286_p0, %s726_s12), 7  ;;  %781 = vmatprep.subr.bf16.mxu0 %v849_v1  ;;  %788 = vmatpush3.bf16.msra.mxu1 %v850_v7  ;;  %v856_v14 = vld [vmem:[%s1034_s3 + $0x8] sm:$0xff]   ;;  %v857_v15 = vld [vmem:[%s1034_s3] sm:$0xff]   ;;  %v858_v16 = vld [vmem:[#allocation2 + $0x38] sm:$0xff]  }
  0x1f   : > { %s727_s13 = sshll.u32 %s1042_s12, 3  ;;  %789 = vmatprep.subr.bf16.mxu1 %v851_v8  ;;  %v859_v17 = vld [vmem:[#allocation2 + $0x30] sm:$0xff]   ;;  %v860_v18 = vld [vmem:[#allocation2 + $0x28] sm:$0xff]   ;;  %v861_v19 = vld [vmem:[#allocation2 + $0x20] sm:$0xff]  }
  0x20   : > { %s289_s16 = scalar_lea.vmem %s1031_s0, %s727_s13  ;;  %v730_v21 = vld [vmem:[%s1033_s2] ss:$0 sm:$0xff]  ;;  %v862_v39 = vld [vmem:[#allocation2 + $0x18] sm:$0xff]   ;;  %v863_v40 = vld [vmem:[#allocation2 + $0x10] sm:$0xff]   ;;  %s295_s26 = scalar_lea.vmem %s1038_s7, %s727_s13 }
  0x21   : > { %v298_v2 = vld [vmem:[%s289_s16] sm:$0xff]  ;;  %v299_v3 = vld [vmem:[%s289_s16 + $0x8] sm:$0xff]  ;;  %v300_v4 = vld [vmem:[%s289_s16 + $0x10] sm:$0xff]  ;;  %782 = vmatpush3.bf16.msra.mxu0 %v849_v1 }
  0x22   : > { %v302_v5 = vpack.c.bf16 %v299_v3, %v298_v2  ;;  %v301_v6 = vld [vmem:[%s289_s16 + $0x18] sm:$0xff]  ;;  %790 = vmatpush3.bf16.msra.mxu1 %v851_v8  ;;  %807 = vmatprep.subr.bf16.mxu0 %v858_v16  ;;  %v864_v41 = vld [vmem:[#allocation2 + $0x8] sm:$0xff]   ;;  %v865_v42 = vld [vmem:[#allocation2] sm:$0xff]  }
  0x23   : > { %v303_v9 = vpack.c.bf16 %v301_v6, %v300_v4  ;;  %791 = vmatprep.subr.bf16.mxu1 %v852_v10  ;;  %v735_v44 = vld [vmem:[%s1035_s4] ss:$0 sm:$0xff] }
  0x24   : > { %783 = vmatprep.mubr.msk.bf16.mxu0 %vm327_vm0, %v302_v5  ;;  %v744_v63 = vld [vmem:[%s1037_s6] ss:$0 sm:$0xff] }
  0x25   : > { %784 = vmatmul.mubr.msk.bf16.vlgmr.msra.gmra.mxu0 %vm327_vm0, %v303_v9 }
  0x26   : > { %792 = vmatpush3.bf16.msra.mxu1 %v852_v10  ;;  %808 = vmatpush3.bf16.msra.mxu0 %v858_v16 }
  0x27   : > { %793 = vmatprep.subr.bf16.mxu1 %v853_v11  ;;  %809 = vmatprep.subr.bf16.mxu0 %v859_v17 }
  0x2a   : > { %794 = vmatpush3.bf16.msra.mxu1 %v853_v11  ;;  %810 = vmatpush3.bf16.msra.mxu0 %v859_v17 }
  0x2b   : > { %795 = vmatprep.subr.bf16.mxu1 %v854_v12  ;;  %811 = vmatprep.subr.bf16.mxu0 %v860_v18 }
  0x2e   : > { %796 = vmatpush3.bf16.msra.mxu1 %v854_v12  ;;  %812 = vmatpush3.bf16.msra.mxu0 %v860_v18 }
  0x2f   : > { %797 = vmatprep.subr.bf16.mxu1 %v855_v13  ;;  %813 = vmatprep.subr.bf16.mxu0 %v861_v19 }
  0x32   : > { %798 = vmatpush3.bf16.msra.mxu1 %v855_v13  ;;  %814 = vmatpush3.bf16.msra.mxu0 %v861_v19 }
  0x33   : > { %799 = vmatprep.subr.bf16.mxu1 %v856_v14  ;;  %815 = vmatprep.subr.bf16.mxu0 %v862_v39 }
  0x36   : > { %800 = vmatpush3.bf16.msra.mxu1 %v856_v14  ;;  %816 = vmatpush3.bf16.msra.mxu0 %v862_v39 }
  0x37   : > { %801 = vmatprep.subr.bf16.mxu1 %v857_v15  ;;  %817 = vmatprep.subr.bf16.mxu0 %v863_v40 }
  0x3a   : > { %802 = vmatpush3.bf16.msra.mxu1 %v857_v15  ;;  %818 = vmatpush3.bf16.msra.mxu0 %v863_v40 }
  0x3b   : > { %819 = vmatprep.subr.bf16.mxu0 %v864_v41 }
  0x3e   : > { %820 = vmatpush3.bf16.msra.mxu0 %v864_v41 }
  0x3f   : > { %821 = vmatprep.subr.bf16.mxu0 %v865_v42 }
  0x42   : > { %822 = vmatpush3.bf16.msra.mxu0 %v865_v42 }
  0xe5   : > { %v785_v20 = vpop.f32.mrf.mxu0 }
  0xe6   : > { %v377_v24 = vadd.f32 %v785_v20, %v730_v21 }
  0xe7   : > { %v368_v22 = vpop.f32.mrf.mxu0 }
  0xe8   : > { %v369_v23 = vadd.f32 %v730_v21, %v368_v22  ;;  %v385_v31 = vmul.f32 0.2, %v377_v24 }
  0xe9   : > { %v786_v25 = vpop.f32.mrf.mxu0 }
  0xea   : > { %v380_v26 = vadd.f32 %v786_v25, %v730_v21  ;;  %v383_v28 = vmul.f32 0.2, %v369_v23  ;;  %v389_v36 = vmax.f32 %v377_v24, %v385_v31 }
  0xeb   : > { %v371_v27 = vpop.f32.mrf.mxu0 }
  0xec   : > { %v386_v29 = vmul.f32 0.2, %v380_v26  ;;  %v372_v30 = vadd.f32 %v730_v21, %v371_v27  ;;  %v387_v34 = vmax.f32 %v369_v23, %v383_v28 }
  0xee   : > { %v384_v32 = vmul.f32 0.2, %v372_v30  ;;  %v390_v33 = vmax.f32 %v380_v26, %v386_v29 }
  0xf0   : > { %v388_v35 = vmax.f32 %v372_v30, %v384_v32  ;;  %v392_v38 = vpack.c.bf16 %v390_v33, %v389_v36 }
  0xf2   : > { %v391_v37 = vpack.c.bf16 %v388_v35, %v387_v34 }
  0xf4   : > { %803 = vmatprep.mubr.bf16.mxu1 %v391_v37 }
  0xf5   : > { %804 = vmatmul.mubr.bf16.vlgmr.msra.gmra.mxu1 %v392_v38 }
 0x1b5   : > { %v805_v43 = vpop.f32.mrf.mxu1 }
 0x1b6   : > { %v507_v47 = vadd.f32 %v805_v43, %v735_v44 }
 0x1b7   : > { %v498_v45 = vpop.f32.mrf.mxu1 }
 0x1b8   : > { %v499_v46 = vadd.f32 %v735_v44, %v498_v45  ;;  %v515_v54 = vmul.f32 0.2, %v507_v47 }
 0x1b9   : > { %v806_v48 = vpop.f32.mrf.mxu1 }
 0x1ba   : > { %v510_v49 = vadd.f32 %v806_v48, %v735_v44  ;;  %v513_v51 = vmul.f32 0.2, %v499_v46  ;;  %v519_v59 = vmax.f32 %v507_v47, %v515_v54 }
 0x1bb   : > { %v501_v50 = vpop.f32.mrf.mxu1 }
 0x1bc   : > { %v516_v52 = vmul.f32 0.2, %v510_v49  ;;  %v502_v53 = vadd.f32 %v735_v44, %v501_v50  ;;  %v517_v57 = vmax.f32 %v499_v46, %v513_v51 }
 0x1be   : > { %v514_v55 = vmul.f32 0.2, %v502_v53  ;;  %v520_v56 = vmax.f32 %v510_v49, %v516_v52 }
 0x1c0   : > { %v518_v58 = vmax.f32 %v502_v53, %v514_v55  ;;  %v522_v61 = vpack.c.bf16 %v520_v56, %v519_v59 }
 0x1c2   : > { %v521_v60 = vpack.c.bf16 %v518_v58, %v517_v57 }
 0x1c4   : > { %823 = vmatprep.mubr.bf16.mxu0 %v521_v60 }
 0x1c5   : > { %824 = vmatmul.mubr.bf16.vlgmr.msra.gmra.mxu0 %v522_v61 }
 0x285   : > { %v825_v62 = vpop.f32.mrf.mxu0 }
 0x286   : > { %v637_v4 = vadd.f32 %v825_v62, %v744_v63 }
 0x287   : > { %v628_v0 = vpop.f32.mrf.mxu0 }
 0x288   : > { %v629_v1 = vadd.f32 %v744_v63, %v628_v0  ;;  %v645_v9 = vmax.f32 %v637_v4, 0.0 }
 0x289   : > { %v826_v2 = vpop.f32.mrf.mxu0 }
 0x28a   : > { %v643_v3 = vmax.f32 %v629_v1, 0.0  ;;  %v640_v6 = vadd.f32 %v826_v2, %v744_v63  ;;  %649 = vst [vmem:[%s295_s26 + $0x10] sm:$0xff] %v645_v9 }
 0x28b   : > { %v631_v5 = vpop.f32.mrf.mxu0 }
 0x28c   : > { %647 = vst [vmem:[%s295_s26] sm:$0xff] %v643_v3  ;;  %v632_v7 = vadd.f32 %v744_v63, %v631_v5  ;;  %v646_v10 = vmax.f32 %v640_v6, 0.0 }
 0x28e   : > { %v644_v8 = vmax.f32 %v632_v7, 0.0  ;;  %650 = vst [vmem:[%s295_s26 + $0x18] sm:$0xff] %v646_v10 }
 0x290   : > { %648 = vst [vmem:[%s295_s26 + $0x8] sm:$0xff] %v644_v8 }
 0x291 PF: > { %s18_s24 = sadd.s32 1, %s902_s24  }
 0x292   : > { %p15_p1 = scmp.ge.s32.totalorder %s18_s24, 4  }
 0x294   :  { %17 = sbr.rel (!%p15_p1) target bundleno = 1 (0x1), region = 83 }
 0x299   :  { %673 = vsyncpa [#allocation3], 1 }
 0x29a   :  { %675 = vsyncpa [#allocation3 + $0x1], 1 }

</bundles_post_ra>
